<compile_context>
chip_gen: v6e
topology: v6e:2x2x1
jax: 0.10.0
libtpu: 0.0.40
codegen_flags: <defaults>
</compile_context>

<pallas_src>
import functools

import jax
import jax.numpy as jnp
from jax.experimental import pallas as pl
from jax.experimental.pallas import tpu as pltpu


_SCHEDULERS = ("linear", "constant", "quadratic")


def _advance_state(state_ref, new_state_ref, accumulation_steps):
    """Shared scalar counter update in SMEM (reads before writes; refs alias).

    state layout (packed (2,) int32): [current_step, small_step]
    `accumulation_steps` is a trace-time static.
    """
    step = state_ref[0]     # int32
    small = state_ref[1]    # int32
    if accumulation_steps:
        inc_small = small + jnp.int32(1)
        wrap = inc_small == jnp.int32(accumulation_steps)
        new_small = jnp.where(wrap, jnp.int32(0), inc_small)
        new_step = jnp.where(wrap, step + jnp.int32(1), step)
    else:
        new_small = small
        new_step = step + jnp.int32(1)
    new_state_ref[0] = new_step
    new_state_ref[1] = new_small
    return new_step


def _train_temp_kernel(state_ref, new_state_ref, temp_ref, *,
                       temp_start, temp_delta, inv_total,
                       accumulation_steps, scheduler):
    """Training step for linear/quadratic: advance counters + emit temp."""
    new_step = _advance_state(state_ref, new_state_ref, accumulation_steps)
    # multiply by a trace-time reciprocal instead of a runtime divide
    frac = new_step.astype(jnp.float32) * jnp.float32(inv_total)
    if scheduler == "quadratic":
        frac = frac * frac
    temp_ref[0] = frac * jnp.float32(temp_delta) + jnp.float32(temp_start)


def _train_state_kernel(state_ref, new_state_ref, *, accumulation_steps):
    """Training step for scheduler='constant': only advance the counters."""
    _advance_state(state_ref, new_state_ref, accumulation_steps)


class TempScheduler:
    """JAX/Pallas port of the PyTorch TempScheduler module."""

    def __init__(self, temp_start, temp_end, total_steps,
                 accumulation_steps=None, scheduler="linear"):
        if scheduler not in _SCHEDULERS:
            raise ValueError(f"{scheduler} scheduler is not supported!")
        self.temp_start = float(temp_start)
        self.temp_end = float(temp_end)
        self.total_steps = int(total_steps)
        # NOTE: accumulation_steps in {None, 0} both mean "no accumulation"
        # (Python truthiness), matching the PyTorch reference.
        self.accumulation_steps = accumulation_steps
        self.scheduler = scheduler

        # packed counter state: [current_step, small_step]
        self.state = jnp.zeros((2,), jnp.int32)
        # Cached temperature for the CURRENT state.  At step 0 every schedule
        # evaluates to temp_start (frac == 0), so this is valid immediately;
        # it is refreshed on every (non-constant) training call.  Eval calls
        # return it with zero device dispatch.
        self._temp = jnp.full((1,), self.temp_start, jnp.float32)

        smem_spec = pl.BlockSpec(memory_space=pltpu.SMEM)
        cost = pl.CostEstimate(flops=10, transcendentals=0, bytes_accessed=16)

        if self.scheduler == "constant":
            kernel = functools.partial(
                _train_state_kernel,
                accumulation_steps=self.accumulation_steps)
            call = pl.pallas_call(
                kernel,
                in_specs=[smem_spec],
                out_specs=smem_spec,
                out_shape=jax.ShapeDtypeStruct((2,), jnp.int32),  # aliased
                input_output_aliases={0: 0},                      # in-place
                cost_estimate=cost,
            )
        else:
            kernel = functools.partial(
                _train_temp_kernel,
                temp_start=self.temp_start,
                temp_delta=self.temp_end - self.temp_start,
                inv_total=1.0 / float(self.total_steps),
                accumulation_steps=self.accumulation_steps,
                scheduler=self.scheduler)
            call = pl.pallas_call(
                kernel,
                in_specs=[smem_spec],
                out_specs=(smem_spec, smem_spec),
                out_shape=(
                    jax.ShapeDtypeStruct((2,), jnp.int32),    # aliased state
                    jax.ShapeDtypeStruct((1,), jnp.float32),  # temperature
                ),
                input_output_aliases={0: 0},                  # in-place state
                cost_estimate=cost,
            )
        # donate the state buffer so the aliased update reuses it in place
        self._train_call = jax.jit(call, donate_argnums=(0,))

    def forward(self, training=None):
        # `training` must be a host-side Python bool / None (the PyTorch
        # module drives control flow from Python attributes the same way).
        if isinstance(training, jax.Array):
            raise TypeError(
                "TempScheduler.forward expects a host Python bool/None for "
                "`training`, not a traced/device value.")
        if not training:
            # Eval fast path: the schedule is NOT advanced and the temperature
            # is unchanged -> return the cached (1,) f32 device array with
            # zero dispatch / zero data movement.
            return self._temp
        if self.scheduler == "constant":
            # Advance counters on device; temperature never changes.
            self.state = self._train_call(self.state)
            return self._temp
        new_state, temp = self._train_call(self.state)
        self.state = new_state
        self._temp = temp
        # Keep the temperature on device (shape (1,) f32); consumers should
        # use it inside jit instead of forcing a host sync every step.
        return temp

    __call__ = forward


def _ref_forward(state, training, temp_start, temp_end, total_steps,
                 accumulation_steps, scheduler):
    """Pure-python reference mirroring the PyTorch module."""
    current_step, small_step = state
    if training:
        if accumulation_steps:
            small_step += 1
            if small_step == accumulation_steps:
                small_step = 0
                current_step += 1
        else:
            current_step += 1
    frac = current_step / total_steps
    if scheduler == "linear":
        temp = frac * (temp_end - temp_start) + temp_start
    elif scheduler == "constant":
        temp = temp_start
    elif scheduler == "quadratic":
        temp = frac ** 2 * (temp_end - temp_start) + temp_start
    return (current_step, small_step), temp


if __name__ == "__main__":
    # deterministic "inputs": config + sequence of training flags
    key = jax.random.PRNGKey(0)
    train_flags = [bool(b) for b in
                   jax.random.bernoulli(key, 0.8, (8,)).tolist()]
    # also exercise the eval / None-default fast path explicitly
    train_flags += [False, None, True]

    configs = [
        dict(temp_start=1.0, temp_end=0.1, total_steps=16,
             accumulation_steps=None, scheduler="linear"),
        dict(temp_start=2.0, temp_end=0.5, total_steps=16,
             accumulation_steps=2, scheduler="quadratic"),
        dict(temp_start=0.7, temp_end=0.0, total_steps=16,
             accumulation_steps=None, scheduler="constant"),
        dict(temp_start=1.0, temp_end=0.1, total_steps=10,   # non-pow2 steps
             accumulation_steps=3, scheduler="linear"),
    ]

    last = None
    for cfg in configs:
        sched = TempScheduler(cfg["temp_start"], cfg["temp_end"],
                              cfg["total_steps"],
                              accumulation_steps=cfg["accumulation_steps"],
                              scheduler=cfg["scheduler"])
        ref_state = (0, 0)
        for tf in train_flags:
            temp = sched.forward(training=tf)
            last = temp
            ref_state, ref_temp = _ref_forward(
                ref_state, bool(tf), cfg["temp_start"], cfg["temp_end"],
                cfg["total_steps"], cfg["accumulation_steps"],
                cfg["scheduler"])
            # host reads below are for TEST VALIDATION only (not the hot path)
            got = float(jax.block_until_ready(temp)[0])
            assert abs(got - ref_temp) < 1e-5, (
                f"temp mismatch: {got} vs {ref_temp} for cfg {cfg}")
            state_host = jax.device_get(sched.state)
            assert int(state_host[0]) == ref_state[0], (
                f"current_step mismatch for cfg {cfg}")
            assert int(state_host[1]) == ref_state[1], (
                f"small_step mismatch for cfg {cfg}")

    jax.block_until_ready(last)
    print("KERNEL_OK")
</pallas_src>

<mosaic_0001>
module attributes {stable_mosaic.version = 11 : i64} {
  func.func @_train_temp_kernel(%arg0: memref<2xi32, #tpu.memory_space<smem>>, %arg1: memref<2xi32, #tpu.memory_space<smem>>, %arg2: memref<1xf32, #tpu.memory_space<smem>>) attributes {dimension_semantics = [], scalar_prefetch = 0 : i64, scratch_operands = 0 : i64, tpu.core_type = #tpu.core_type<tc>} {
    %c0 = arith.constant 0 : index
    %0 = memref.load %arg0[%c0] : memref<2xi32, #tpu.memory_space<smem>>
    %c1 = arith.constant 1 : index
    %1 = memref.load %arg0[%c1] : memref<2xi32, #tpu.memory_space<smem>>
    %c1_i32 = arith.constant 1 : i32
    %2 = arith.addi %0, %c1_i32 : i32
    %c0_0 = arith.constant 0 : index
    %3 = memref.load %arg1[%c0_0] : memref<2xi32, #tpu.memory_space<smem>>
    memref.store %2, %arg1[%c0_0] : memref<2xi32, #tpu.memory_space<smem>>
    %c1_1 = arith.constant 1 : index
    %4 = memref.load %arg1[%c1_1] : memref<2xi32, #tpu.memory_space<smem>>
    memref.store %1, %arg1[%c1_1] : memref<2xi32, #tpu.memory_space<smem>>
    %5 = arith.sitofp %2 : i32 to f32
    %cst = arith.constant 6.250000e-02 : f32
    %6 = arith.mulf %5, %cst : f32
    %cst_2 = arith.constant -0.899999976 : f32
    %7 = arith.mulf %6, %cst_2 : f32
    %cst_3 = arith.constant 1.000000e+00 : f32
    %8 = arith.addf %7, %cst_3 : f32
    %c0_4 = arith.constant 0 : index
    %9 = memref.load %arg2[%c0_4] : memref<1xf32, #tpu.memory_space<smem>>
    memref.store %8, %arg2[%c0_4] : memref<1xf32, #tpu.memory_space<smem>>
    return
  }
}

</mosaic_0001>

<bundles_post_ra>
// kernel: tpu_custom_call.1
= control target key start
LH: loop header
LB: loop body
LE: loop exit
PB: predicated region body
PF: predicated region fallthrough
CT: control target
= control target key end

     0   :  { %8 = vsyncpa [#allocation3], 0  ;;  %s123_s0 = inlined_call_operand.hbm [shape: s32[2], index: 0, kind: input, shape index: {}, may-alias: {0,1}]   ;;  %s124_s1 = inlined_call_operand.hbm [shape: s32[2], index: 1, kind: output, shape index: {0}, may-alias: {0,1}]   ;;  %s125_s2 = inlined_call_operand.hbm [shape: f32[1], index: 2, kind: output, shape index: {1}]  }
   0x1   :  { %9 = vsyncpa [#allocation4], 0 }
   0x2   :  { %10 = vsyncpa [#allocation7], 0  ;;  %s96_s9 = smov [#allocation2]  }
   0x3   :  { %18 = dma.hbm_to_smem %s123_s0, 16, %s96_s9, [#allocation3]  }
   0x4   :  { %90 = dma.done.wait [#allocation3], 16  }
   0x5   :  { %91 = vsyncadd [#allocation3], 4294967280 }
   0x6   :  { %22 = sfence }
   0x7   :  { %s23_s12 = sld [smem:[#allocation2]]  ;;  %s97_s16 = smov [#allocation5]  }
   0x8   :  { %s62_s13 = sld [smem:[#allocation2 + $0x1]]  ;;  %s98_s22 = smov [#allocation6]  }
   0xd   :  { %s25_s14 = sadd.s32 1, %s23_s12 }
   0xe   :  { %27 = sst [smem:[#allocation5]] %s25_s14  ;;  %s30_s15 = scvt.s32.f32 %s25_s14 }
   0xf   :  { %29 = sst [smem:[#allocation5 + $0x1]] %s62_s13 }
  0x10   :  { %43 = dma.smem_to_hbm %s97_s16, 16, %s124_s1, [#allocation4]  }
  0x11   :  { %s31_s19 = smul.f32 0.0625, %s30_s15 }
  0x13   :  { %s32_s20 = smul.f32 -0.9, %s31_s19 }
  0x15   :  { %s33_s21 = sadd.f32 1.0, %s32_s20 }
  0x17   :  { %35 = sst [smem:[#allocation6]] %s33_s21 }
  0x18   :  { %51 = dma.smem_to_hbm %s98_s22, 16, %s125_s2, [#allocation7]  }
  0x19   :  { %92 = dma.done.wait [#allocation4], 16  }
  0x1a   :  { %93 = vsyncadd [#allocation4], 4294967280 }
  0x1b   :  { %94 = dma.done.wait [#allocation7], 16  }
  0x1c   :  { %95 = vsyncadd [#allocation7], 4294967280 }
  0x1d   :  { %58 = sfence }
  0x1e   :  { %59 = vsyncpa [#allocation3], 1 }
  0x1f   :  { %60 = vsyncpa [#allocation4], 1 }
  0x20   :  { %61 = vsyncpa [#allocation7], 1 }

</bundles_post_ra>
